<compile_context>
chip_gen: v7x
topology: tpu7x:2x2x1
jax: 0.10.0
libtpu: 0.0.40
codegen_flags: <defaults>
</compile_context>

<pallas_src>
import jax
import jax.numpy as jnp
from jax import lax
from jax.experimental import pallas as pl
from jax.experimental.pallas import tpu as pltpu

HIDDEN_SIZE = 32
TILE_B_MAX = 1024  # rows of s per grid step (~64 KB/block at state_dim=16)


def critic_kernel(s_ref, w1_ref, b1_ref, w2_ref, b2_ref, wv_ref, bv_ref, out_ref):
    # fc1 + ReLU in natural (batch-major) layout: (TILE_B, S) @ (S, H) -> (TILE_B, H)
    x1 = jnp.dot(s_ref[...], w1_ref[...], preferred_element_type=jnp.float32)
    x1 = jnp.maximum(x1 + b1_ref[...], 0.0)                     # b1 is (1, H)
    # fc2 + ReLU in feature-major layout so the value head lands lane-dense:
    #   x2t[o, b] = sum_h w2[o, h] * x1[b, h]   -> (H, TILE_B)
    x2t = lax.dot_general(w2_ref[...], x1, (((1,), (1,)), ((), ())),
                          preferred_element_type=jnp.float32)
    x2t = jnp.maximum(x2t + b2_ref[...], 0.0)                   # b2 is (H, 1): broadcast over lanes
    # fc_v: (1, H) @ (H, TILE_B) -> (1, TILE_B) lane-dense row of values
    v = jnp.dot(wv_ref[...], x2t, preferred_element_type=jnp.float32) + bv_ref[...]
    out_ref[...] = v.reshape(out_ref.shape).astype(out_ref.dtype)


def critic_forward(s, params):
    """s: (B, state_dim) float32 -> (B, 1) float32 value estimates."""
    w1, b1, w2, b2, wv, bv = (params["w1"], params["b1"], params["w2"],
                              params["b2"], params["wv"], params["bv"])
    B, state_dim = s.shape
    H = w1.shape[1]

    # Batch tile: multiple of 128 (lane-dense output block), capped at TILE_B_MAX.
    tile_b = min(TILE_B_MAX, pl.cdiv(B, 128) * 128)
    num_tiles = pl.cdiv(B, tile_b)
    padded_b = num_tiles * tile_b
    if padded_b != B:
        s = jnp.pad(s, ((0, padded_b - B), (0, 0)))

    def resident(shape):
        # Same block every grid step -> weight/bias stays in VMEM across the whole grid.
        return pl.BlockSpec(shape, lambda i, _n=len(shape): (0,) * _n)

    flops = 2 * padded_b * (state_dim * H + H * H + H)
    bytes_accessed = 4 * (padded_b * state_dim + padded_b
                          + w1.size + b1.size + w2.size + b2.size + wv.size + bv.size)

    out = pl.pallas_call(
        critic_kernel,
        out_shape=jax.ShapeDtypeStruct((num_tiles, 1, tile_b), jnp.float32),
        grid=(num_tiles,),
        in_specs=[
            pl.BlockSpec((tile_b, state_dim), lambda i: (i, 0)),   # streamed activations
            resident(w1.shape), resident(b1.shape),
            resident(w2.shape), resident(b2.shape),
            resident(wv.shape), resident(bv.shape),
        ],
        out_specs=pl.BlockSpec((1, 1, tile_b), lambda i: (i, 0, 0)),
        compiler_params=pltpu.CompilerParams(dimension_semantics=("parallel",)),
        cost_estimate=pl.CostEstimate(flops=flops, transcendentals=0,
                                      bytes_accessed=bytes_accessed),
    )(s, w1, b1, w2, b2, wv, bv)

    # (num_tiles, 1, tile_b) is batch-ordered when flattened; drop the padded rows.
    return out.reshape(padded_b, 1)[:B]


def init_params(key, state_dim):
    """PyTorch-Linear-style init: U(-1/sqrt(fan_in), 1/sqrt(fan_in)).

    Layouts: w1 is (in, out) [pre-transposed for x @ w1]; w2, wv are PyTorch (out, in);
    b1 is (1, H) row, b2 is (H, 1) column, bv is (1, 1).
    """
    ks = jax.random.split(key, 6)

    def unif(k, shape, fan_in):
        bound = 1.0 / jnp.sqrt(jnp.float32(fan_in))
        return jax.random.uniform(k, shape, jnp.float32, -bound, bound)

    return {
        "w1": unif(ks[0], (state_dim, HIDDEN_SIZE), state_dim),
        "b1": unif(ks[1], (1, HIDDEN_SIZE), state_dim),
        "w2": unif(ks[2], (HIDDEN_SIZE, HIDDEN_SIZE), HIDDEN_SIZE),
        "b2": unif(ks[3], (HIDDEN_SIZE, 1), HIDDEN_SIZE),
        "wv": unif(ks[4], (1, HIDDEN_SIZE), HIDDEN_SIZE),
        "bv": unif(ks[5], (1, 1), HIDDEN_SIZE),
    }


def critic_reference(s, p):
    x = jnp.maximum(s @ p["w1"] + p["b1"], 0.0)
    x = jnp.maximum(x @ p["w2"].T + p["b2"].T, 0.0)
    return x @ p["wv"].T + p["bv"]


if __name__ == "__main__":
    key = jax.random.PRNGKey(0)
    k_param, k_state, k_state2 = jax.random.split(key, 3)

    batch = 8
    state_dim = 16

    params = init_params(k_param, state_dim)

    # Small shape (single tile, padded to 128 rows internally).
    s = jax.random.normal(k_state, (batch, state_dim), jnp.float32)
    v = jax.block_until_ready(critic_forward(s, params))
    v_ref = critic_reference(s, params)
    assert v.shape == (batch, 1), v.shape
    assert jnp.allclose(v, v_ref, atol=1e-4, rtol=1e-4), (v, v_ref)

    # Larger batch: exercises multiple grid tiles + padding path.
    big = 2500
    s_big = jax.random.normal(k_state2, (big, state_dim), jnp.float32)
    v_big = jax.block_until_ready(critic_forward(s_big, params))
    v_big_ref = critic_reference(s_big, params)
    assert v_big.shape == (big, 1), v_big.shape
    assert jnp.allclose(v_big, v_big_ref, atol=1e-4, rtol=1e-4)

    print("KERNEL_OK")
</pallas_src>

<mosaic_0001>
module attributes {stable_mosaic.version = 11 : i64} {
  func.func @critic_kernel(%arg0: i32, %arg1: memref<128x16xf32, #tpu.memory_space<vmem>>, %arg2: memref<16x32xf32, #tpu.memory_space<vmem>>, %arg3: memref<1x32xf32, #tpu.memory_space<vmem>>, %arg4: memref<32x32xf32, #tpu.memory_space<vmem>>, %arg5: memref<32x1xf32, #tpu.memory_space<vmem>>, %arg6: memref<1x32xf32, #tpu.memory_space<vmem>>, %arg7: memref<1x1xf32, #tpu.memory_space<vmem>>, %arg8: memref<1x1x128xf32, #tpu.memory_space<vmem>>) attributes {dimension_semantics = [#tpu.dimension_semantics<parallel>], iteration_bounds = array<i64: 1>, scalar_prefetch = 0 : i64, scratch_operands = 0 : i64, tpu.core_type = #tpu.core_type<tc>, window_params = [{transform_indices = @transform_0, window_bounds = array<i64: 128, 16>}, {pipeline_mode = #tpu.pipeline_mode<synchronous>, transform_indices = @transform_1, window_bounds = array<i64: 16, 32>}, {pipeline_mode = #tpu.pipeline_mode<synchronous>, transform_indices = @transform_2, window_bounds = array<i64: 1, 32>}, {pipeline_mode = #tpu.pipeline_mode<synchronous>, transform_indices = @transform_3, window_bounds = array<i64: 32, 32>}, {pipeline_mode = #tpu.pipeline_mode<synchronous>, transform_indices = @transform_4, window_bounds = array<i64: 32, 1>}, {pipeline_mode = #tpu.pipeline_mode<synchronous>, transform_indices = @transform_5, window_bounds = array<i64: 1, 32>}, {pipeline_mode = #tpu.pipeline_mode<synchronous>, transform_indices = @transform_6, window_bounds = array<i64: 1, 1>}, {transform_indices = @transform_7, window_bounds = array<i64: 1, 1, 128>}]} {
    %c0 = arith.constant 0 : index
    %c0_0 = arith.constant 0 : index
    %0 = vector.load %arg1[%c0, %c0_0] : memref<128x16xf32, #tpu.memory_space<vmem>>, vector<128x16xf32>
    %c0_1 = arith.constant 0 : index
    %c0_2 = arith.constant 0 : index
    %1 = vector.load %arg2[%c0_1, %c0_2] : memref<16x32xf32, #tpu.memory_space<vmem>>, vector<16x32xf32>
    %cst = arith.constant dense<0.000000e+00> : vector<128x32xf32>
    %2 = tpu.matmul %0, %1, %cst {dimension_numbers = #tpu.dot_dimension_numbers<[1], [0], [0], [1], [0, 0, 1, 1], [], []>} : vector<128x16xf32>, vector<16x32xf32>, vector<128x32xf32> -> vector<128x32xf32>
    %c0_3 = arith.constant 0 : index
    %c0_4 = arith.constant 0 : index
    %3 = vector.load %arg3[%c0_3, %c0_4] : memref<1x32xf32, #tpu.memory_space<vmem>>, vector<1x32xf32>
    %4 = vector.broadcast %3 : vector<1x32xf32> to vector<128x32xf32>
    %5 = arith.addf %2, %4 : vector<128x32xf32>
    %cst_5 = arith.constant 0.000000e+00 : f32
    %6 = vector.broadcast %cst_5 : f32 to vector<128x32xf32>
    %7 = arith.maximumf %5, %6 : vector<128x32xf32>
    %c0_6 = arith.constant 0 : index
    %c0_7 = arith.constant 0 : index
    %8 = vector.load %arg4[%c0_6, %c0_7] : memref<32x32xf32, #tpu.memory_space<vmem>>, vector<32x32xf32>
    %cst_8 = arith.constant dense<0.000000e+00> : vector<32x128xf32>
    %9 = tpu.matmul %8, %7, %cst_8 {dimension_numbers = #tpu.dot_dimension_numbers<[1], [1], [0], [0], [0, 0, 1, 0], [], []>} : vector<32x32xf32>, vector<128x32xf32>, vector<32x128xf32> -> vector<32x128xf32>
    %c0_9 = arith.constant 0 : index
    %c0_10 = arith.constant 0 : index
    %10 = vector.load %arg5[%c0_9, %c0_10] : memref<32x1xf32, #tpu.memory_space<vmem>>, vector<32x1xf32>
    %11 = vector.broadcast %10 : vector<32x1xf32> to vector<32x128xf32>
    %12 = arith.addf %9, %11 : vector<32x128xf32>
    %cst_11 = arith.constant 0.000000e+00 : f32
    %13 = vector.broadcast %cst_11 : f32 to vector<32x128xf32>
    %14 = arith.maximumf %12, %13 : vector<32x128xf32>
    %c0_12 = arith.constant 0 : index
    %c0_13 = arith.constant 0 : index
    %15 = vector.load %arg6[%c0_12, %c0_13] : memref<1x32xf32, #tpu.memory_space<vmem>>, vector<1x32xf32>
    %cst_14 = arith.constant dense<0.000000e+00> : vector<1x128xf32>
    %16 = tpu.matmul %15, %14, %cst_14 {dimension_numbers = #tpu.dot_dimension_numbers<[1], [0], [0], [1], [0, 0, 1, 1], [], []>} : vector<1x32xf32>, vector<32x128xf32>, vector<1x128xf32> -> vector<1x128xf32>
    %c0_15 = arith.constant 0 : index
    %c0_16 = arith.constant 0 : index
    %17 = vector.load %arg7[%c0_15, %c0_16] : memref<1x1xf32, #tpu.memory_space<vmem>>, vector<1x1xf32>
    %18 = vector.broadcast %17 : vector<1x1xf32> to vector<1x128xf32>
    %19 = arith.addf %16, %18 : vector<1x128xf32>
    %20 = vector.shape_cast %19 : vector<1x128xf32> to vector<1x1x128xf32>
    %c0_17 = arith.constant 0 : index
    %c0_18 = arith.constant 0 : index
    %c0_19 = arith.constant 0 : index
    %21 = vector.load %arg8[%c0_17, %c0_18, %c0_19] : memref<1x1x128xf32, #tpu.memory_space<vmem>>, vector<1x1x128xf32>
    tpu.vector_store %arg8[%c0_17, %c0_18, %c0_19], %20 {strides = array<i32>} : memref<1x1x128xf32, #tpu.memory_space<vmem>>, vector<1x1x128xf32>,
    return
  }
  func.func @transform_0(%arg0: i32) -> (i32, i32) {
    %c0_i32 = arith.constant 0 : i32
    %c0_i32_0 = arith.constant 0 : i32
    return %arg0, %c0_i32 : i32, i32
  }
  func.func @transform_1(%arg0: i32) -> (i32, i32) {
    %c0_i32 = arith.constant 0 : i32
    %c0_i32_0 = arith.constant 0 : i32
    %c0_i32_1 = arith.constant 0 : i32
    return %c0_i32, %c0_i32_0 : i32, i32
  }
  func.func @transform_2(%arg0: i32) -> (i32, i32) {
    %c0_i32 = arith.constant 0 : i32
    %c0_i32_0 = arith.constant 0 : i32
    %c0_i32_1 = arith.constant 0 : i32
    return %c0_i32, %c0_i32_0 : i32, i32
  }
  func.func @transform_3(%arg0: i32) -> (i32, i32) {
    %c0_i32 = arith.constant 0 : i32
    %c0_i32_0 = arith.constant 0 : i32
    %c0_i32_1 = arith.constant 0 : i32
    return %c0_i32, %c0_i32_0 : i32, i32
  }
  func.func @transform_4(%arg0: i32) -> (i32, i32) {
    %c0_i32 = arith.constant 0 : i32
    %c0_i32_0 = arith.constant 0 : i32
    %c0_i32_1 = arith.constant 0 : i32
    return %c0_i32, %c0_i32_0 : i32, i32
  }
  func.func @transform_5(%arg0: i32) -> (i32, i32) {
    %c0_i32 = arith.constant 0 : i32
    %c0_i32_0 = arith.constant 0 : i32
    %c0_i32_1 = arith.constant 0 : i32
    return %c0_i32, %c0_i32_0 : i32, i32
  }
  func.func @transform_6(%arg0: i32) -> (i32, i32) {
    %c0_i32 = arith.constant 0 : i32
    %c0_i32_0 = arith.constant 0 : i32
    %c0_i32_1 = arith.constant 0 : i32
    return %c0_i32, %c0_i32_0 : i32, i32
  }
  func.func @transform_7(%arg0: i32) -> (i32, i32, i32) {
    %c0_i32 = arith.constant 0 : i32
    %c0_i32_0 = arith.constant 0 : i32
    %c0_i32_1 = arith.constant 0 : i32
    return %arg0, %c0_i32, %c0_i32_0 : i32, i32, i32
  }
}

</mosaic_0001>

<bundles_post_ra>
// kernel: tpu_custom_call.1
= control target key start
LH: loop header
LB: loop body
LE: loop exit
PB: predicated region body
PF: predicated region fallthrough
CT: control target
= control target key end

     0   :  { %s991_s0 = inlined_call_operand.vmem [shape: f32[128,16], index: 0, kind: input, shape index: {}]   ;;  %s992_s1 = inlined_call_operand.vmem [shape: f32[16,32], index: 1, kind: input, shape index: {}]   ;;  %s993_s2 = inlined_call_operand.vmem [shape: f32[1,32], index: 2, kind: input, shape index: {}]   ;;  %s994_s3 = inlined_call_operand.vmem [shape: f32[32,32], index: 3, kind: input, shape index: {}]   ;;  %s995_s4 = inlined_call_operand.vmem [shape: f32[32,1], index: 4, kind: input, shape index: {}]   ;;  %s996_s5 = inlined_call_operand.vmem [shape: f32[1,32], index: 5, kind: input, shape index: {}]   ;;  %s997_s6 = inlined_call_operand.<no memory space> [shape: f32[1,1], index: 6, kind: input, shape index: {}]   ;;  %s998_s7 = inlined_call_operand.hbm [shape: f32[1,1,128], index: 7, kind: output, shape index: {}]  }
   0x1   :  { %v12_v0 = vstv %s997_s6 }
   0x2   :  { %13 = vst [vmem:[#allocation2] sm:$0x1] %v12_v0 }
   0x3   :  { %v45_v1 = vld [vmem:[%s992_s1] sm:$0xff]  ;;  %v46_v2 = vld [vmem:[%s992_s1 + $0x8] sm:$0xff]  ;;  %vm54_vm0 = vcmask 130048   ;;  %v31_v6 = vld [vmem:[%s991_s0 + $0x10] sm:$0xff] }
   0x4   :  { %v29_v3 = vld [vmem:[%s991_s0] sm:$0xff]  ;;  %v699_v4 = vpack.c.bf16 %v46_v2, %v45_v1  ;;  %v30_v5 = vld [vmem:[%s991_s0 + $0x8] sm:$0xff] }
   0x5   :  { %626 = vmatprep.mubr.msk.f32.mxu0 %vm54_vm0, %v29_v3 }
   0x6   :  { %700 = vmatprep.subr.bf16.mxu0 %v699_v4 }
   0x7   :  { %702 = vmatpush3.bf16.msra.mxu0 %v699_v4 }
   0x8   :  { %14 = vsyncpa [#allocation4], 0  ;;  %v32_v7 = vld [vmem:[%s991_s0 + $0x18] sm:$0xff]  ;;  %v33_v8 = vld [vmem:[%s991_s0 + $0x20] sm:$0xff]  ;;  %vm292_vm1 = vcmask 261120   ;;  %v788_v22 = vmov 0  }
   0x9   :  { %v34_v9 = vld [vmem:[%s991_s0 + $0x28] sm:$0xff]  ;;  %v35_v10 = vld [vmem:[%s991_s0 + $0x30] sm:$0xff]  ;;  %v36_v11 = vld [vmem:[%s991_s0 + $0x38] sm:$0xff]  ;;  %762 = vset.pattern.permute.xlu0 %v788_v22  ;;  %763 = vset.pattern.permute.xlu1 %v788_v22  ;;  %vm790_vm3 = vmmov 0   ;;  %s792_s28 = smov [#allocation3]  }
   0xa   :  { %627 = vmatmul.mubr.msk.f32.vlgmr.msra.gmra.mrb[0].mxu0 %vm54_vm0, %v30_v5  ;;  %v37_v12 = vld [vmem:[%s991_s0 + $0x40] sm:$0xff]  ;;  %v38_v13 = vld [vmem:[%s991_s0 + $0x48] sm:$0xff]  ;;  %v39_v14 = vld [vmem:[%s991_s0 + $0x50] sm:$0xff]  ;;  %s533_s29 = sshll.u32 %s792_s28, 4  ;;  %s534_s29 = int_to_ptr.vmem [resolvable:$true] %s533_s29 }
   0xb   :  { %629 = vmatprep.mubr.msk.f32.mxu0 %vm54_vm0, %v31_v6  ;;  %v40_v15 = vld [vmem:[%s991_s0 + $0x58] sm:$0xff]  ;;  %v41_v16 = vld [vmem:[%s991_s0 + $0x60] sm:$0xff]  ;;  %v42_v17 = vld [vmem:[%s991_s0 + $0x68] sm:$0xff]  ;;  %s764_s30 = scalar_lea.vmem %s534_s29, 16  ;;  %s768_s8 = scalar_lea.vmem %s534_s29, 32 }
   0xc   :  { %v43_v18 = vld [vmem:[%s991_s0 + $0x70] sm:$0xff]  ;;  %v44_v19 = vld [vmem:[%s991_s0 + $0x78] sm:$0xff]  ;;  %v264_v20 = vld [vmem:[%s994_s3] sm:$0xff]  ;;  %p765_p0 = scmp.ne.s32.totalorder %s534_s29, %s764_s30  ;;  %p769_p1 = scmp.lt.s32.totalorder %s534_s29, %s534_s29 }
   0xd   :  { %682 = vmatprep.mubr.msk.f32.mxu1 %vm292_vm1, %v264_v20  ;;  %v268_v21 = vld [vmem:[%s995_s4] sm:$0xff]  ;;  %v270_v23 = vld [vmem:[%s995_s4 + $0x10] sm:$0xff]  ;;  %v269_v24 = vld [vmem:[%s995_s4 + $0x8] sm:$0xff]  ;;  %p770_p2 = scmp.lt.s32.totalorder %s768_s8, %s764_s30 }
   0xe   :  { %630 = vmatmul.mubr.msk.f32.gmra.mrb[2].mxu0 %vm54_vm0, %v32_v7  ;;  %274 = vperm.xlu0 %762, %v268_v21   ;;  %v271_v25 = vld [vmem:[%s995_s4 + $0x18] sm:$0xff]  ;;  %v443_v26 = vld [vmem:[#allocation2] sm:$0x1]  ;;  %vm927_vm2 = vmpackc.low %vm292_vm1, %vm292_vm1 }
   0xf   :  { %632 = vmatprep.mubr.msk.f32.mxu0 %vm54_vm0, %v33_v8  ;;  %284 = vperm.xlu1 %763, %v270_v23   ;;  %v541_v27 = vld [vmem:[%s993_s2] ss:$0 sm:$0xff]  ;;  %v265_v21 = vld [vmem:[%s994_s3 + $0x8] sm:$0xff]  ;;  %v266_v22 = vld [vmem:[%s994_s3 + $0x10] sm:$0xff]  ;;  %p771_p3 = por %p770_p2, %p769_p1 }
  0x10   :  { %v267_v23 = vld [vmem:[%s994_s3 + $0x18] sm:$0xff] }
  0x11   :  { %p772_p4 = pnand %p771_p3, %p765_p0 }
  0x12   :  { %633 = vmatmul.mubr.msk.f32.gmra.mrb[4].mxu0 %vm54_vm0, %v34_v9  ;;  %279 = vperm.xlu0 %762, %v269_v24   ;;  %v789_v24 = vmov 0.0|0.0  }
  0x13   :  { %635 = vmatprep.mubr.msk.f32.mxu0 %vm54_vm0, %v35_v10  ;;  %289 = vperm.xlu1 %763, %v271_v25   ;;  %v791_v25 = vmov 0.0  }
  0x14   :  { %751 = vmatprep.subr.bf16.mxu0 %v789_v24 }
  0x16   :  { %636 = vmatmul.mubr.msk.f32.gmra.mrb[6].mxu0 %vm54_vm0, %v36_v11  ;;  %446 = vperm.xlu0 %762, %v443_v26  }
  0x17   :  { %638 = vmatprep.mubr.msk.f32.mxu0 %vm54_vm0, %v37_v12 }
  0x1a   :  { %639 = vmatmul.mubr.msk.f32.gmra.mrb[8].mxu0 %vm54_vm0, %v38_v13 }
  0x1b   :  { %641 = vmatprep.mubr.msk.f32.mxu0 %vm54_vm0, %v39_v14 }
  0x1e   :  { %642 = vmatmul.mubr.msk.f32.gmra.mrb[10].mxu0 %vm54_vm0, %v40_v15 }
  0x1f   :  { %644 = vmatprep.mubr.msk.f32.mxu0 %vm54_vm0, %v41_v16 }
  0x22   :  { %645 = vmatmul.mubr.msk.f32.gmra.mrb[12].mxu0 %vm54_vm0, %v42_v17 }
  0x23   :  { %647 = vmatprep.mubr.msk.f32.mxu0 %vm54_vm0, %v43_v18 }
  0x26   :  { %648 = vmatmul.mubr.msk.f32.gmra.mrb[14].mxu0 %vm54_vm0, %v44_v19 }
  0x27   :  { %696 = vmatprep.mubr.msk.f32.mxu0 %vm790_vm3, %v791_v25 }
  0x8d   :  { %v275_v26 = vpop.permute.xlu0 %274 }
  0xdd   :  { %v628_v28 = vpop.f32.mrb[0].mxu0 }
  0xde   :  { %v175_v29 = vadd.f32 %v628_v28, %v541_v27  ;;  %v169_v30 = vpop.f32.mrb[1].mxu0  ;;  %v280_v28 = vpop.permute.xlu0 %279 }
  0xdf   :  { %v170_v31 = vadd.f32 %v541_v27, %v169_v30 }
  0xe0   :  { %v249_v32 = vmax.f32 %v175_v29, 0.0 }
  0xe1   :  { %v248_v33 = vmax.f32 %v170_v31, 0.0  ;;  %v631_v34 = vpop.f32.mrb[2].mxu0 }
  0xe2   :  { %v185_v35 = vadd.f32 %v631_v34, %v541_v27  ;;  %v179_v36 = vpop.f32.mrb[3].mxu0 }
  0xe3   :  { %v180_v38 = vadd.f32 %v541_v27, %v179_v36  ;;  %v703_v39 = vpack.c.bf16 %v249_v32, %v248_v33 }
  0xe4   :  { %v251_v40 = vmax.f32 %v185_v35, 0.0 }
  0xe5   :  { %v250_v41 = vmax.f32 %v180_v38, 0.0  ;;  %705 = vmatprep.subr.msk.bf16.mxu1 %vm927_vm2, %v703_v39  ;;  %v634_v42 = vpop.f32.mrb[4].mxu0 }
  0xe6   :  { %708 = vmatpush3.bf16.xpose.msk.msra.mxu1 %vm927_vm2, %v703_v39  ;;  %v195_v43 = vadd.f32 %v634_v42, %v541_v27  ;;  %v189_v44 = vpop.f32.mrb[5].mxu0 }
  0xe7   :  { %v709_v45 = vpack.c.bf16 %v251_v40, %v250_v41  ;;  %v190_v46 = vadd.f32 %v541_v27, %v189_v44  ;;  %v442_v44 = vld [vmem:[%s996_s5] sm:$0x1] }
  0xe8   :  { %v253_v47 = vmax.f32 %v195_v43, 0.0 }
  0xe9   :  { %711 = vmatprep.subr.msk.bf16.mxu1 %vm927_vm2, %v709_v45  ;;  %v252_v48 = vmax.f32 %v190_v46, 0.0  ;;  %v637_v49 = vpop.f32.mrb[6].mxu0 }
  0xea   :  { %v205_v50 = vadd.f32 %v637_v49, %v541_v27  ;;  %v199_v51 = vpop.f32.mrb[7].mxu0 }
  0xeb   :  { %v715_v52 = vpack.c.bf16 %v253_v47, %v252_v48  ;;  %v200_v53 = vadd.f32 %v541_v27, %v199_v51  ;;  %v447_v48 = vpop.permute.xlu0 %446 }
  0xec   :  { %v255_v54 = vmax.f32 %v205_v50, 0.0 }
  0xed   :  { %v254_v55 = vmax.f32 %v200_v53, 0.0  ;;  %v640_v56 = vpop.f32.mrb[8].mxu0 }
  0xee   :  { %714 = vmatpush3.bf16.xpose.msk.msra.mxu1 %vm927_vm2, %v709_v45  ;;  %v215_v57 = vadd.f32 %v640_v56, %v541_v27  ;;  %v209_v58 = vpop.f32.mrb[9].mxu0  ;;  %v449_v45 = vlaneseq }
  0xef   :  { %717 = vmatprep.subr.msk.bf16.mxu1 %vm927_vm2, %v715_v52  ;;  %v721_v59 = vpack.c.bf16 %v255_v54, %v254_v55  ;;  %v210_v60 = vadd.f32 %v541_v27, %v209_v58 }
  0xf0   :  { %v257_v61 = vmax.f32 %v215_v57, 0.0  ;;  %v450_v46 = vshrl.u32 %v449_v45, 7 }
  0xf1   :  { %v256_v62 = vmax.f32 %v210_v60, 0.0  ;;  %v643_v63 = vpop.f32.mrb[10].mxu0 }
  0xf2   :  { %v225_v0 = vadd.f32 %v643_v63, %v541_v27  ;;  %v219_v1 = vpop.f32.mrb[11].mxu0  ;;  %v451_v47 = vsub.s32 0, %v450_v46 }
  0xf3   :  { %v727_v2 = vpack.c.bf16 %v257_v61, %v256_v62  ;;  %v220_v3 = vadd.f32 %v541_v27, %v219_v1 }
  0xf4   :  { %v259_v4 = vmax.f32 %v225_v0, 0.0  ;;  %v452_v49 = vrot.slane %v447_v48, %v451_v47 }
  0xf5   :  { %v258_v5 = vmax.f32 %v220_v3, 0.0  ;;  %v646_v6 = vpop.f32.mrb[12].mxu0 }
  0xf6   :  { %720 = vmatpush3.bf16.xpose.msk.msra.mxu1 %vm927_vm2, %v715_v52  ;;  %v235_v7 = vadd.f32 %v646_v6, %v541_v27  ;;  %v229_v8 = vpop.f32.mrb[13].mxu0 }
  0xf7   :  { %723 = vmatprep.subr.msk.bf16.mxu1 %vm927_vm2, %v721_v59  ;;  %v733_v9 = vpack.c.bf16 %v259_v4, %v258_v5  ;;  %v230_v10 = vadd.f32 %v541_v27, %v229_v8 }
  0xf8   :  { %v261_v11 = vmax.f32 %v235_v7, 0.0 }
  0xf9   :  { %v260_v12 = vmax.f32 %v230_v10, 0.0  ;;  %v649_v13 = vpop.f32.mrb[14].mxu0 }
  0xfa   :  { %v245_v14 = vadd.f32 %v649_v13, %v541_v27  ;;  %v239_v15 = vpop.f32.mrb[15].mxu0 }
  0xfb   :  { %v739_v16 = vpack.c.bf16 %v261_v11, %v260_v12  ;;  %v240_v17 = vadd.f32 %v541_v27, %v239_v15  ;;  %v285_v27 = vpop.permute.xlu1 %284 }
  0xfc   :  { %v263_v18 = vmax.f32 %v245_v14, 0.0 }
  0xfd   :  { %v262_v19 = vmax.f32 %v240_v17, 0.0 }
  0xfe   :  { %726 = vmatpush3.bf16.xpose.msk.msra.mxu1 %vm927_vm2, %v721_v59 }
  0xff   :  { %729 = vmatprep.subr.msk.bf16.mxu1 %vm927_vm2, %v727_v2  ;;  %v745_v20 = vpack.c.bf16 %v263_v18, %v262_v19  ;;  %v290_v36 = vpop.permute.xlu1 %289 }
 0x106   :  { %732 = vmatpush3.bf16.xpose.msk.msra.mxu1 %vm927_vm2, %v727_v2 }
 0x107   :  { %735 = vmatprep.subr.msk.bf16.mxu1 %vm927_vm2, %v733_v9 }
 0x10e   :  { %738 = vmatpush3.bf16.xpose.msk.msra.mxu1 %vm927_vm2, %v733_v9 }
 0x10f   :  { %741 = vmatprep.subr.msk.bf16.mxu1 %vm927_vm2, %v739_v16 }
 0x116   :  { %744 = vmatpush3.bf16.xpose.msk.msra.mxu1 %vm927_vm2, %v739_v16 }
 0x117   :  { %747 = vmatprep.subr.msk.bf16.mxu1 %vm927_vm2, %v745_v20 }
 0x11e   :  { %750 = vmatpush3.bf16.xpose.msk.msra.mxu1 %vm927_vm2, %v745_v20 }
 0x125   :  { %683 = vmatmul.mubr.msk.f32.vlgmr.msra.gmra.mrb[0].mxu1 %vm292_vm1, %v265_v21 }
 0x126   :  { %685 = vmatprep.mubr.msk.f32.mxu1 %vm292_vm1, %v266_v22 }
 0x129   :  { %686 = vmatmul.mubr.msk.f32.gmra.mrb[2].mxu1 %vm292_vm1, %v267_v23 }
 0x1f8   :  { %v684_v29 = vpop.f32.mrb[0].mxu1 }
 0x1f9   :  { %v425_v30 = vadd.f32 %v684_v29, %v280_v28  ;;  %v419_v31 = vpop.f32.mrb[1].mxu1 }
 0x1fa   :  { %v420_v32 = vadd.f32 %v419_v31, %v275_v26 }
 0x1fb   :  { %v439_v33 = vmax.f32 %v425_v30, 0.0 }
 0x1fc   :  { %v438_v34 = vmax.f32 %v420_v32, 0.0  ;;  %v687_v35 = vpop.f32.mrb[2].mxu1 }
 0x1fd   :  { %v435_v37 = vadd.f32 %v687_v35, %v290_v36  ;;  %v429_v38 = vpop.f32.mrb[3].mxu1 }
 0x1fe   :  { %v752_v39 = vpack.c.bf16 %v439_v33, %v438_v34  ;;  %v430_v40 = vadd.f32 %v429_v38, %v285_v27 }
 0x1ff   :  { %v441_v41 = vmax.f32 %v435_v37, 0.0 }
 0x200   :  { %v440_v42 = vmax.f32 %v430_v40, 0.0  ;;  %753 = vmatpush3.bf16.msra.mxu0 %v752_v39 }
 0x201   :  { %754 = vmatprep.subr.bf16.mxu0 %v789_v24 }
 0x202   :  { %v755_v43 = vpack.c.bf16 %v441_v41, %v440_v42 }
 0x204   :  { %756 = vmatpush3.bf16.msra.mxu0 %v755_v43 }
 0x207   :  { %697 = vmatmul.mubr.msk.f32.vlgmr.msra.gmra.mrb[16].mxu0 %vm292_vm1, %v442_v44 }
 0x2da   :  { %v522_v50 = vpop.f32.mrb[16].mxu0 }
 0x2db   :  { %v523_v51 = vadd.f32 %v522_v50, %v452_v49  ;;  %v698_v52 = vpop.f32.mrb[17].mxu0 }
 0x2dd   :  { %526 = vst [vmem:[#allocation3] sm:$0x1] %v523_v51 }
 0x2de   :  { %775 = shalt.err (!%p772_p4)
}
 0x2df   :  { %s776_s9 = scalar_lea.hbm %s998_s7, 16 }
 0x2e0   :  { %p777_p5 = scmp.ne.s32.totalorder %s998_s7, %s776_s9  ;;  %p780_p6 = scmp.lt.u32.totalorder %s776_s9, %s998_s7 }
 0x2e2   :  { %p782_p7 = pnand %p780_p6, %p777_p5 }
 0x2e4   :  { %785 = shalt.err (!%p782_p7)
}
 0x2e5   :  { %536 = dma.vmem_to_hbm [thread:$0]  %s534_s29, 16, %s998_s7, [#allocation4]  }
 0x2e6   :  { %786 = dma.done.wait [#allocation4], 16  }
 0x2e7   :  { %787 = vsyncadd [#allocation4], 4294967280 }
 0x2e8   :  { %540 = vsyncpa [#allocation4], 1 }

</bundles_post_ra>
